<compile_context>
chip_gen: v7x
topology: tpu7x:2x2x1
jax: 0.10.0
libtpu: 0.0.40
codegen_flags: <defaults>
</compile_context>

<pallas_src>
import functools

import numpy as np
import jax
import jax.numpy as jnp
from jax.experimental import pallas as pl
from jax.experimental.pallas import tpu as pltpu


# --------------------------------------------------------------- upsample operands

def _bilinear_matrix_align_corners(out_size, in_size):
    """L[o, i] such that upsampled = L @ src (1-D bilinear, align_corners=True)."""
    M = np.zeros((out_size, in_size), dtype=np.float32)
    if in_size == 1 or out_size == 1:
        M[:, 0] = 1.0
        return M
    scale = (in_size - 1) / (out_size - 1)
    for o in range(out_size):
        s = o * scale
        i0 = min(int(np.floor(s)), in_size - 1)
        i1 = min(i0 + 1, in_size - 1)
        f = s - i0
        M[o, i0] += 1.0 - f
        M[o, i1] += f
    return M


def _make_upsample_operands(H, W):
    Hp, Wp = H // 2, W // 2
    Lh = _bilinear_matrix_align_corners(H, Hp)          # (H, Hp)
    Lw = _bilinear_matrix_align_corners(W, Wp)          # (W, Wp)
    # LweT[w', w] = Lw[w, j] when w' == 2j, else 0: folds the "pooled values live at
    # even flat columns" selection directly into the right-hand upsample matmul.
    LweT = np.zeros((W, W), np.float32)
    LweT[0::2, :] = Lw.T
    return Lh.astype(np.float32), Lw.astype(np.float32), LweT


# --------------------------------------------------------------- Pallas kernel

def attention_gate_kernel(x_ref, wall_ref, btp_ref, bc_ref, lh_ref, lwet_ref,
                          o_ref, phis_ref, meven_ref, upflat_ref, *, H, W, n_out):
    # x_ref   : (1, Cin, P)   pixels on lanes
    # wall    : (2+Cout, Cin) rows = [w_theta; w_phi; w_conv]
    # btp     : (2, 1)        [b_theta; b_phi]
    # bc      : (Cout, 1)
    # lh      : (H, H//2)     row-upsample matrix
    # lwet    : (W, W)        Lw^T with the even-column selection folded in
    # o_ref   : (1, Cout, P)
    P = H * W
    Hp = H // 2

    x = x_ref[0, :, :]                                               # (Cin, P)

    # ---- one fused MXU matmul: [theta; phi; un-gated conv] --------------------
    z = jnp.dot(wall_ref[...], x, preferred_element_type=jnp.float32)  # (2+Cout, P)
    btp = btp_ref[...]                                               # (2, 1)
    theta = z[0:1, :] + btp[0:1, :]                                  # (1, P)
    phi = z[1:2, :] + btp[1:2, :]                                    # (1, P)
    conv = z[2:2 + n_out, :]                                         # (Cout, P)

    # ---- 2x2 max pool of phi via shifts of the flat 1-channel vector ----------
    # phi goes into a zero-padded flat scratch so the shifted windows are plain
    # (unaligned) VMEM loads.  The padded tail only ever feeds flat positions the
    # upsample matrices ignore (odd row / odd col), so zeros are harmless.
    phis_ref[:, pl.ds(P, W + 1)] = jnp.zeros((1, W + 1), jnp.float32)
    phis_ref[:, pl.ds(0, P)] = phi
    s01 = phis_ref[:, pl.ds(1, P)]                                   # phi[p + 1]
    s10 = phis_ref[:, pl.ds(W, P)]                                   # phi[p + W]
    s11 = phis_ref[:, pl.ds(W + 1, P)]                               # phi[p + W + 1]
    m = jnp.maximum(jnp.maximum(phi, s01), jnp.maximum(s10, s11))    # (1, P)

    # Valid pooled values sit at flat positions (2i)*W + 2j.  Gather the even rows
    # into a (Hp, W) tile; odd columns are zeroed out by lwet in the matmul below.
    for i in range(Hp):
        meven_ref[pl.ds(i, 1), :] = m[:, 2 * i * W: 2 * i * W + W]

    # ---- separable bilinear upsample (align_corners=True): Lh @ pooled @ Lw^T --
    t = jnp.dot(meven_ref[...], lwet_ref[...],
                preferred_element_type=jnp.float32)                  # (Hp, W)
    up2 = jnp.dot(lh_ref[...], t, preferred_element_type=jnp.float32)  # (H, W)

    # flatten (H, W) -> (1, P) through a small VMEM scratch (row-major order)
    for h in range(H):
        upflat_ref[:, pl.ds(h * W, W)] = up2[h:h + 1, :]
    phi_up = upflat_ref[...]                                         # (1, P)

    # ---- gate + fused final conv ----------------------------------------------
    g = theta + phi_up
    # sigmoid as EUP exp + reciprocal (approx=True available with looser tolerance)
    psi = pl.reciprocal(1.0 + jnp.exp(-g), approx=False)             # (1, P)
    y = psi * conv + bc_ref[...]                                     # (Cout, P)
    o_ref[0, :, :] = y.astype(o_ref.dtype)


# --------------------------------------------------------------- wrapper

def attention_gate_forward(x_nchw, wt, bt, wp, bp, wc, bc, Lh, LweT):
    N, Cin, H, W = x_nchw.shape
    Cg = wt.shape[0]
    Cout = wc.shape[0]
    assert Cg == 1, "gate_channels must be 1 (psi.expand_as(x) requires it)"
    assert H % 2 == 0 and W % 2 == 0, "max_pool2d(2,2) pooling needs even H, W"
    P = H * W
    Hp = H // 2

    # NCHW -> (N, Cin, P): free reshape (no transpose / extra HBM round-trip).
    x_flat = x_nchw.reshape(N, Cin, P)

    # Fuse theta / phi / conv weights into a single matmul operand.
    wall = jnp.concatenate([wt, wp, wc], axis=0).astype(jnp.float32)   # (2+Cout, Cin)
    btp = jnp.concatenate([bt, bp]).reshape(2, 1).astype(jnp.float32)
    bc2 = bc.reshape(Cout, 1).astype(jnp.float32)

    kernel = functools.partial(attention_gate_kernel, H=H, W=W, n_out=Cout)

    out_flat = pl.pallas_call(
        kernel,
        out_shape=jax.ShapeDtypeStruct((N, Cout, P), jnp.float32),
        grid=(N,),
        in_specs=[
            pl.BlockSpec((1, Cin, P), lambda b: (b, 0, 0)),        # x (Cin, P)
            pl.BlockSpec((2 + Cout, Cin), lambda b: (0, 0)),       # fused weights
            pl.BlockSpec((2, 1), lambda b: (0, 0)),                # [b_theta; b_phi]
            pl.BlockSpec((Cout, 1), lambda b: (0, 0)),             # b_conv
            pl.BlockSpec((H, Hp), lambda b: (0, 0)),               # Lh
            pl.BlockSpec((W, W), lambda b: (0, 0)),                # Lw^T (even rows)
        ],
        out_specs=pl.BlockSpec((1, Cout, P), lambda b: (b, 0, 0)),
        scratch_shapes=[
            pltpu.VMEM((1, P + W + 1), jnp.float32),               # padded flat phi
            pltpu.VMEM((Hp, W), jnp.float32),                      # even-row pooled
            pltpu.VMEM((1, P), jnp.float32),                       # flattened upsample
        ],
        compiler_params=pltpu.CompilerParams(
            dimension_semantics=("parallel",)),                    # v7x: batch / TC
    )(x_flat, wall, btp, bc2, Lh, LweT)

    # (N, Cout, P) -> NCHW: again a free reshape.
    return out_flat.reshape(N, Cout, H, W)


# --------------------------------------------------------------- pure-JAX reference

def attention_gate_reference(x, wt, bt, wp, bp, wc, bc, Lh, Lw):
    N, Cin, H, W = x.shape
    theta = jnp.einsum('nchw,gc->nghw', x, wt) + bt.reshape(1, -1, 1, 1)
    phi = jnp.einsum('nchw,gc->nghw', x, wp) + bp.reshape(1, -1, 1, 1)
    Cg = phi.shape[1]
    phi_p = phi.reshape(N, Cg, H // 2, 2, W // 2, 2).max(axis=(3, 5))
    phi_u = jnp.einsum('hi,ngij,wj->nghw', Lh, phi_p, Lw)
    psi = jax.nn.sigmoid(theta + phi_u)
    gated = psi * x                                  # psi.expand_as(x) * x (Cg == 1)
    return jnp.einsum('nchw,dc->ndhw', gated, wc) + bc.reshape(1, -1, 1, 1)


# --------------------------------------------------------------- main

if __name__ == "__main__":
    N, Cin, Cout, Cg = 2, 4, 4, 1
    H = W = 16

    key = jax.random.PRNGKey(0)
    ks = jax.random.split(key, 8)
    k_in = 1.0 / np.sqrt(Cin)

    # Conv2d 1x1 weights in PyTorch-native (out_channels, in_channels) layout.
    wt = jax.random.uniform(ks[0], (Cg, Cin), jnp.float32, -k_in, k_in)
    bt = jax.random.uniform(ks[1], (Cg,), jnp.float32, -k_in, k_in)
    wp = jax.random.uniform(ks[2], (Cg, Cin), jnp.float32, -k_in, k_in)
    bp = jax.random.uniform(ks[3], (Cg,), jnp.float32, -k_in, k_in)
    wc = jax.random.uniform(ks[4], (Cout, Cin), jnp.float32, -k_in, k_in)
    bc = jax.random.uniform(ks[5], (Cout,), jnp.float32, -k_in, k_in)
    # (self.psi conv of the PyTorch module is never used in forward(); omitted.)

    x = jax.random.normal(ks[7], (N, Cin, H, W), jnp.float32)   # PyTorch NCHW input

    Lh_np, Lw_np, LweT_np = _make_upsample_operands(H, W)
    Lh = jnp.asarray(Lh_np)
    Lw = jnp.asarray(Lw_np)
    LweT = jnp.asarray(LweT_np)

    out = attention_gate_forward(x, wt, bt, wp, bp, wc, bc, Lh, LweT)
    out = jax.block_until_ready(out)

    ref = attention_gate_reference(x, wt, bt, wp, bp, wc, bc, Lh, Lw)
    ref = jax.block_until_ready(ref)

    if out.shape != (N, Cout, H, W):
        raise AssertionError(f"bad output shape {out.shape}")
    if not np.allclose(np.asarray(out), np.asarray(ref), atol=1e-3, rtol=1e-3):
        max_err = float(np.max(np.abs(np.asarray(out) - np.asarray(ref))))
        raise AssertionError(f"kernel mismatch vs reference, max abs err = {max_err}")

    print("KERNEL_OK")
</pallas_src>

<mosaic_0001>
module attributes {stable_mosaic.version = 11 : i64} {
  func.func @attention_gate_kernel(%arg0: i32, %arg1: memref<1x4x256xf32, #tpu.memory_space<vmem>>, %arg2: memref<6x4xf32, #tpu.memory_space<vmem>>, %arg3: memref<2x1xf32, #tpu.memory_space<vmem>>, %arg4: memref<4x1xf32, #tpu.memory_space<vmem>>, %arg5: memref<16x8xf32, #tpu.memory_space<vmem>>, %arg6: memref<16x16xf32, #tpu.memory_space<vmem>>, %arg7: memref<1x4x256xf32, #tpu.memory_space<vmem>>, %arg8: memref<1x273xf32, #tpu.memory_space<vmem>>, %arg9: memref<8x16xf32, #tpu.memory_space<vmem>>, %arg10: memref<1x256xf32, #tpu.memory_space<vmem>>) attributes {dimension_semantics = [#tpu.dimension_semantics<parallel>], iteration_bounds = array<i64: 2>, scalar_prefetch = 0 : i64, scratch_operands = 3 : i64, tpu.core_type = #tpu.core_type<tc>, window_params = [{transform_indices = @transform_0, window_bounds = array<i64: 1, 4, 256>}, {pipeline_mode = #tpu.pipeline_mode<synchronous>, transform_indices = @transform_1, window_bounds = array<i64: 6, 4>}, {pipeline_mode = #tpu.pipeline_mode<synchronous>, transform_indices = @transform_2, window_bounds = array<i64: 2, 1>}, {pipeline_mode = #tpu.pipeline_mode<synchronous>, transform_indices = @transform_3, window_bounds = array<i64: 4, 1>}, {pipeline_mode = #tpu.pipeline_mode<synchronous>, transform_indices = @transform_4, window_bounds = array<i64: 16, 8>}, {pipeline_mode = #tpu.pipeline_mode<synchronous>, transform_indices = @transform_5, window_bounds = array<i64: 16, 16>}, {transform_indices = @transform_6, window_bounds = array<i64: 1, 4, 256>}]} {
    %c0 = arith.constant 0 : index
    %c0_0 = arith.constant 0 : index
    %c0_1 = arith.constant 0 : index
    %0 = vector.load %arg1[%c0, %c0_0, %c0_1] : memref<1x4x256xf32, #tpu.memory_space<vmem>>, vector<1x4x256xf32>
    %1 = vector.shape_cast %0 : vector<1x4x256xf32> to vector<4x256xf32>
    %c0_2 = arith.constant 0 : index
    %c0_3 = arith.constant 0 : index
    %2 = vector.load %arg2[%c0_2, %c0_3] : memref<6x4xf32, #tpu.memory_space<vmem>>, vector<6x4xf32>
    %cst = arith.constant dense<0.000000e+00> : vector<6x256xf32>
    %3 = tpu.matmul %2, %1, %cst {dimension_numbers = #tpu.dot_dimension_numbers<[1], [0], [0], [1], [0, 0, 1, 1], [], []>} : vector<6x4xf32>, vector<4x256xf32>, vector<6x256xf32> -> vector<6x256xf32>
    %c0_4 = arith.constant 0 : index
    %c0_5 = arith.constant 0 : index
    %4 = vector.load %arg3[%c0_4, %c0_5] : memref<2x1xf32, #tpu.memory_space<vmem>>, vector<2x1xf32>
    %5 = vector.extract_strided_slice %3 {offsets = [0, 0], sizes = [1, 256], strides = [1, 1]} : vector<6x256xf32> to vector<1x256xf32>
    %6 = vector.extract_strided_slice %4 {offsets = [0, 0], sizes = [1, 1], strides = [1, 1]} : vector<2x1xf32> to vector<1x1xf32>
    %7 = vector.broadcast %6 : vector<1x1xf32> to vector<1x256xf32>
    %8 = arith.addf %5, %7 : vector<1x256xf32>
    %9 = vector.extract_strided_slice %3 {offsets = [1, 0], sizes = [1, 256], strides = [1, 1]} : vector<6x256xf32> to vector<1x256xf32>
    %10 = vector.extract_strided_slice %4 {offsets = [1, 0], sizes = [1, 1], strides = [1, 1]} : vector<2x1xf32> to vector<1x1xf32>
    %11 = vector.broadcast %10 : vector<1x1xf32> to vector<1x256xf32>
    %12 = arith.addf %9, %11 : vector<1x256xf32>
    %13 = vector.extract_strided_slice %3 {offsets = [2, 0], sizes = [4, 256], strides = [1, 1]} : vector<6x256xf32> to vector<4x256xf32>
    %cst_6 = arith.constant 0.000000e+00 : f32
    %14 = vector.broadcast %cst_6 : f32 to vector<1x17xf32>
    %c0_7 = arith.constant 0 : index
    %c256 = arith.constant 256 : index
    %15 = vector.load %arg8[%c0_7, %c256] : memref<1x273xf32, #tpu.memory_space<vmem>>, vector<1x17xf32>
    tpu.vector_store %arg8[%c0_7, %c256], %14 {strides = array<i32>} : memref<1x273xf32, #tpu.memory_space<vmem>>, vector<1x17xf32>,
    %c0_8 = arith.constant 0 : index
    %c0_9 = arith.constant 0 : index
    %16 = vector.load %arg8[%c0_8, %c0_9] : memref<1x273xf32, #tpu.memory_space<vmem>>, vector<1x256xf32>
    tpu.vector_store %arg8[%c0_8, %c0_9], %12 {strides = array<i32>} : memref<1x273xf32, #tpu.memory_space<vmem>>, vector<1x256xf32>,
    %c0_10 = arith.constant 0 : index
    %c1 = arith.constant 1 : index
    %17 = vector.load %arg8[%c0_10, %c1] : memref<1x273xf32, #tpu.memory_space<vmem>>, vector<1x256xf32>
    %c0_11 = arith.constant 0 : index
    %c16 = arith.constant 16 : index
    %18 = vector.load %arg8[%c0_11, %c16] : memref<1x273xf32, #tpu.memory_space<vmem>>, vector<1x256xf32>
    %c0_12 = arith.constant 0 : index
    %c17 = arith.constant 17 : index
    %19 = vector.load %arg8[%c0_12, %c17] : memref<1x273xf32, #tpu.memory_space<vmem>>, vector<1x256xf32>
    %20 = arith.maximumf %12, %17 : vector<1x256xf32>
    %21 = arith.maximumf %18, %19 : vector<1x256xf32>
    %22 = arith.maximumf %20, %21 : vector<1x256xf32>
    %23 = vector.extract_strided_slice %22 {offsets = [0, 0], sizes = [1, 16], strides = [1, 1]} : vector<1x256xf32> to vector<1x16xf32>
    %c0_13 = arith.constant 0 : index
    %c0_14 = arith.constant 0 : index
    %24 = vector.load %arg9[%c0_13, %c0_14] : memref<8x16xf32, #tpu.memory_space<vmem>>, vector<1x16xf32>
    tpu.vector_store %arg9[%c0_13, %c0_14], %23 {strides = array<i32>} : memref<8x16xf32, #tpu.memory_space<vmem>>, vector<1x16xf32>,
    %25 = vector.extract_strided_slice %22 {offsets = [0, 32], sizes = [1, 16], strides = [1, 1]} : vector<1x256xf32> to vector<1x16xf32>
    %c1_15 = arith.constant 1 : index
    %c0_16 = arith.constant 0 : index
    %26 = vector.load %arg9[%c1_15, %c0_16] : memref<8x16xf32, #tpu.memory_space<vmem>>, vector<1x16xf32>
    tpu.vector_store %arg9[%c1_15, %c0_16], %25 {strides = array<i32>} : memref<8x16xf32, #tpu.memory_space<vmem>>, vector<1x16xf32>,
    %27 = vector.extract_strided_slice %22 {offsets = [0, 64], sizes = [1, 16], strides = [1, 1]} : vector<1x256xf32> to vector<1x16xf32>
    %c2 = arith.constant 2 : index
    %c0_17 = arith.constant 0 : index
    %28 = vector.load %arg9[%c2, %c0_17] : memref<8x16xf32, #tpu.memory_space<vmem>>, vector<1x16xf32>
    tpu.vector_store %arg9[%c2, %c0_17], %27 {strides = array<i32>} : memref<8x16xf32, #tpu.memory_space<vmem>>, vector<1x16xf32>,
    %29 = vector.extract_strided_slice %22 {offsets = [0, 96], sizes = [1, 16], strides = [1, 1]} : vector<1x256xf32> to vector<1x16xf32>
    %c3 = arith.constant 3 : index
    %c0_18 = arith.constant 0 : index
    %30 = vector.load %arg9[%c3, %c0_18] : memref<8x16xf32, #tpu.memory_space<vmem>>, vector<1x16xf32>
    tpu.vector_store %arg9[%c3, %c0_18], %29 {strides = array<i32>} : memref<8x16xf32, #tpu.memory_space<vmem>>, vector<1x16xf32>,
    %31 = vector.extract_strided_slice %22 {offsets = [0, 128], sizes = [1, 16], strides = [1, 1]} : vector<1x256xf32> to vector<1x16xf32>
    %c4 = arith.constant 4 : index
    %c0_19 = arith.constant 0 : index
    %32 = vector.load %arg9[%c4, %c0_19] : memref<8x16xf32, #tpu.memory_space<vmem>>, vector<1x16xf32>
    tpu.vector_store %arg9[%c4, %c0_19], %31 {strides = array<i32>} : memref<8x16xf32, #tpu.memory_space<vmem>>, vector<1x16xf32>,
    %33 = vector.extract_strided_slice %22 {offsets = [0, 160], sizes = [1, 16], strides = [1, 1]} : vector<1x256xf32> to vector<1x16xf32>
    %c5 = arith.constant 5 : index
    %c0_20 = arith.constant 0 : index
    %34 = vector.load %arg9[%c5, %c0_20] : memref<8x16xf32, #tpu.memory_space<vmem>>, vector<1x16xf32>
    tpu.vector_store %arg9[%c5, %c0_20], %33 {strides = array<i32>} : memref<8x16xf32, #tpu.memory_space<vmem>>, vector<1x16xf32>,
    %35 = vector.extract_strided_slice %22 {offsets = [0, 192], sizes = [1, 16], strides = [1, 1]} : vector<1x256xf32> to vector<1x16xf32>
    %c6 = arith.constant 6 : index
    %c0_21 = arith.constant 0 : index
    %36 = vector.load %arg9[%c6, %c0_21] : memref<8x16xf32, #tpu.memory_space<vmem>>, vector<1x16xf32>
    tpu.vector_store %arg9[%c6, %c0_21], %35 {strides = array<i32>} : memref<8x16xf32, #tpu.memory_space<vmem>>, vector<1x16xf32>,
    %37 = vector.extract_strided_slice %22 {offsets = [0, 224], sizes = [1, 16], strides = [1, 1]} : vector<1x256xf32> to vector<1x16xf32>
    %c7 = arith.constant 7 : index
    %c0_22 = arith.constant 0 : index
    %38 = vector.load %arg9[%c7, %c0_22] : memref<8x16xf32, #tpu.memory_space<vmem>>, vector<1x16xf32>
    tpu.vector_store %arg9[%c7, %c0_22], %37 {strides = array<i32>} : memref<8x16xf32, #tpu.memory_space<vmem>>, vector<1x16xf32>,
    %c0_23 = arith.constant 0 : index
    %c0_24 = arith.constant 0 : index
    %39 = vector.load %arg9[%c0_23, %c0_24] : memref<8x16xf32, #tpu.memory_space<vmem>>, vector<8x16xf32>
    %c0_25 = arith.constant 0 : index
    %c0_26 = arith.constant 0 : index
    %40 = vector.load %arg6[%c0_25, %c0_26] : memref<16x16xf32, #tpu.memory_space<vmem>>, vector<16x16xf32>
    %cst_27 = arith.constant dense<0.000000e+00> : vector<8x16xf32>
    %41 = tpu.matmul %39, %40, %cst_27 {dimension_numbers = #tpu.dot_dimension_numbers<[1], [0], [0], [1], [0, 0, 1, 1], [], []>} : vector<8x16xf32>, vector<16x16xf32>, vector<8x16xf32> -> vector<8x16xf32>
    %c0_28 = arith.constant 0 : index
    %c0_29 = arith.constant 0 : index
    %42 = vector.load %arg5[%c0_28, %c0_29] : memref<16x8xf32, #tpu.memory_space<vmem>>, vector<16x8xf32>
    %cst_30 = arith.constant dense<0.000000e+00> : vector<16x16xf32>
    %43 = tpu.matmul %42, %41, %cst_30 {dimension_numbers = #tpu.dot_dimension_numbers<[1], [0], [0], [1], [0, 0, 1, 1], [], []>} : vector<16x8xf32>, vector<8x16xf32>, vector<16x16xf32> -> vector<16x16xf32>
    %44 = vector.extract_strided_slice %43 {offsets = [0, 0], sizes = [1, 16], strides = [1, 1]} : vector<16x16xf32> to vector<1x16xf32>
    %c0_31 = arith.constant 0 : index
    %c0_32 = arith.constant 0 : index
    %45 = vector.load %arg10[%c0_31, %c0_32] : memref<1x256xf32, #tpu.memory_space<vmem>>, vector<1x16xf32>
    tpu.vector_store %arg10[%c0_31, %c0_32], %44 {strides = array<i32>} : memref<1x256xf32, #tpu.memory_space<vmem>>, vector<1x16xf32>,
    %46 = vector.extract_strided_slice %43 {offsets = [1, 0], sizes = [1, 16], strides = [1, 1]} : vector<16x16xf32> to vector<1x16xf32>
    %c0_33 = arith.constant 0 : index
    %c16_34 = arith.constant 16 : index
    %47 = vector.load %arg10[%c0_33, %c16_34] : memref<1x256xf32, #tpu.memory_space<vmem>>, vector<1x16xf32>
    tpu.vector_store %arg10[%c0_33, %c16_34], %46 {strides = array<i32>} : memref<1x256xf32, #tpu.memory_space<vmem>>, vector<1x16xf32>,
    %48 = vector.extract_strided_slice %43 {offsets = [2, 0], sizes = [1, 16], strides = [1, 1]} : vector<16x16xf32> to vector<1x16xf32>
    %c0_35 = arith.constant 0 : index
    %c32 = arith.constant 32 : index
    %49 = vector.load %arg10[%c0_35, %c32] : memref<1x256xf32, #tpu.memory_space<vmem>>, vector<1x16xf32>
    tpu.vector_store %arg10[%c0_35, %c32], %48 {strides = array<i32>} : memref<1x256xf32, #tpu.memory_space<vmem>>, vector<1x16xf32>,
    %50 = vector.extract_strided_slice %43 {offsets = [3, 0], sizes = [1, 16], strides = [1, 1]} : vector<16x16xf32> to vector<1x16xf32>
    %c0_36 = arith.constant 0 : index
    %c48 = arith.constant 48 : index
    %51 = vector.load %arg10[%c0_36, %c48] : memref<1x256xf32, #tpu.memory_space<vmem>>, vector<1x16xf32>
    tpu.vector_store %arg10[%c0_36, %c48], %50 {strides = array<i32>} : memref<1x256xf32, #tpu.memory_space<vmem>>, vector<1x16xf32>,
    %52 = vector.extract_strided_slice %43 {offsets = [4, 0], sizes = [1, 16], strides = [1, 1]} : vector<16x16xf32> to vector<1x16xf32>
    %c0_37 = arith.constant 0 : index
    %c64 = arith.constant 64 : index
    %53 = vector.load %arg10[%c0_37, %c64] : memref<1x256xf32, #tpu.memory_space<vmem>>, vector<1x16xf32>
    tpu.vector_store %arg10[%c0_37, %c64], %52 {strides = array<i32>} : memref<1x256xf32, #tpu.memory_space<vmem>>, vector<1x16xf32>,
    %54 = vector.extract_strided_slice %43 {offsets = [5, 0], sizes = [1, 16], strides = [1, 1]} : vector<16x16xf32> to vector<1x16xf32>
    %c0_38 = arith.constant 0 : index
    %c80 = arith.constant 80 : index
    %55 = vector.load %arg10[%c0_38, %c80] : memref<1x256xf32, #tpu.memory_space<vmem>>, vector<1x16xf32>
    tpu.vector_store %arg10[%c0_38, %c80], %54 {strides = array<i32>} : memref<1x256xf32, #tpu.memory_space<vmem>>, vector<1x16xf32>,
    %56 = vector.extract_strided_slice %43 {offsets = [6, 0], sizes = [1, 16], strides = [1, 1]} : vector<16x16xf32> to vector<1x16xf32>
    %c0_39 = arith.constant 0 : index
    %c96 = arith.constant 96 : index
    %57 = vector.load %arg10[%c0_39, %c96] : memref<1x256xf32, #tpu.memory_space<vmem>>, vector<1x16xf32>
    tpu.vector_store %arg10[%c0_39, %c96], %56 {strides = array<i32>} : memref<1x256xf32, #tpu.memory_space<vmem>>, vector<1x16xf32>,
    %58 = vector.extract_strided_slice %43 {offsets = [7, 0], sizes = [1, 16], strides = [1, 1]} : vector<16x16xf32> to vector<1x16xf32>
    %c0_40 = arith.constant 0 : index
    %c112 = arith.constant 112 : index
    %59 = vector.load %arg10[%c0_40, %c112] : memref<1x256xf32, #tpu.memory_space<vmem>>, vector<1x16xf32>
    tpu.vector_store %arg10[%c0_40, %c112], %58 {strides = array<i32>} : memref<1x256xf32, #tpu.memory_space<vmem>>, vector<1x16xf32>,
    %60 = vector.extract_strided_slice %43 {offsets = [8, 0], sizes = [1, 16], strides = [1, 1]} : vector<16x16xf32> to vector<1x16xf32>
    %c0_41 = arith.constant 0 : index
    %c128 = arith.constant 128 : index
    %61 = vector.load %arg10[%c0_41, %c128] : memref<1x256xf32, #tpu.memory_space<vmem>>, vector<1x16xf32>
    tpu.vector_store %arg10[%c0_41, %c128], %60 {strides = array<i32>} : memref<1x256xf32, #tpu.memory_space<vmem>>, vector<1x16xf32>,
    %62 = vector.extract_strided_slice %43 {offsets = [9, 0], sizes = [1, 16], strides = [1, 1]} : vector<16x16xf32> to vector<1x16xf32>
    %c0_42 = arith.constant 0 : index
    %c144 = arith.constant 144 : index
    %63 = vector.load %arg10[%c0_42, %c144] : memref<1x256xf32, #tpu.memory_space<vmem>>, vector<1x16xf32>
    tpu.vector_store %arg10[%c0_42, %c144], %62 {strides = array<i32>} : memref<1x256xf32, #tpu.memory_space<vmem>>, vector<1x16xf32>,
    %64 = vector.extract_strided_slice %43 {offsets = [10, 0], sizes = [1, 16], strides = [1, 1]} : vector<16x16xf32> to vector<1x16xf32>
    %c0_43 = arith.constant 0 : index
    %c160 = arith.constant 160 : index
    %65 = vector.load %arg10[%c0_43, %c160] : memref<1x256xf32, #tpu.memory_space<vmem>>, vector<1x16xf32>
    tpu.vector_store %arg10[%c0_43, %c160], %64 {strides = array<i32>} : memref<1x256xf32, #tpu.memory_space<vmem>>, vector<1x16xf32>,
    %66 = vector.extract_strided_slice %43 {offsets = [11, 0], sizes = [1, 16], strides = [1, 1]} : vector<16x16xf32> to vector<1x16xf32>
    %c0_44 = arith.constant 0 : index
    %c176 = arith.constant 176 : index
    %67 = vector.load %arg10[%c0_44, %c176] : memref<1x256xf32, #tpu.memory_space<vmem>>, vector<1x16xf32>
    tpu.vector_store %arg10[%c0_44, %c176], %66 {strides = array<i32>} : memref<1x256xf32, #tpu.memory_space<vmem>>, vector<1x16xf32>,
    %68 = vector.extract_strided_slice %43 {offsets = [12, 0], sizes = [1, 16], strides = [1, 1]} : vector<16x16xf32> to vector<1x16xf32>
    %c0_45 = arith.constant 0 : index
    %c192 = arith.constant 192 : index
    %69 = vector.load %arg10[%c0_45, %c192] : memref<1x256xf32, #tpu.memory_space<vmem>>, vector<1x16xf32>
    tpu.vector_store %arg10[%c0_45, %c192], %68 {strides = array<i32>} : memref<1x256xf32, #tpu.memory_space<vmem>>, vector<1x16xf32>,
    %70 = vector.extract_strided_slice %43 {offsets = [13, 0], sizes = [1, 16], strides = [1, 1]} : vector<16x16xf32> to vector<1x16xf32>
    %c0_46 = arith.constant 0 : index
    %c208 = arith.constant 208 : index
    %71 = vector.load %arg10[%c0_46, %c208] : memref<1x256xf32, #tpu.memory_space<vmem>>, vector<1x16xf32>
    tpu.vector_store %arg10[%c0_46, %c208], %70 {strides = array<i32>} : memref<1x256xf32, #tpu.memory_space<vmem>>, vector<1x16xf32>,
    %72 = vector.extract_strided_slice %43 {offsets = [14, 0], sizes = [1, 16], strides = [1, 1]} : vector<16x16xf32> to vector<1x16xf32>
    %c0_47 = arith.constant 0 : index
    %c224 = arith.constant 224 : index
    %73 = vector.load %arg10[%c0_47, %c224] : memref<1x256xf32, #tpu.memory_space<vmem>>, vector<1x16xf32>
    tpu.vector_store %arg10[%c0_47, %c224], %72 {strides = array<i32>} : memref<1x256xf32, #tpu.memory_space<vmem>>, vector<1x16xf32>,
    %74 = vector.extract_strided_slice %43 {offsets = [15, 0], sizes = [1, 16], strides = [1, 1]} : vector<16x16xf32> to vector<1x16xf32>
    %c0_48 = arith.constant 0 : index
    %c240 = arith.constant 240 : index
    %75 = vector.load %arg10[%c0_48, %c240] : memref<1x256xf32, #tpu.memory_space<vmem>>, vector<1x16xf32>
    tpu.vector_store %arg10[%c0_48, %c240], %74 {strides = array<i32>} : memref<1x256xf32, #tpu.memory_space<vmem>>, vector<1x16xf32>,
    %c0_49 = arith.constant 0 : index
    %c0_50 = arith.constant 0 : index
    %76 = vector.load %arg10[%c0_49, %c0_50] : memref<1x256xf32, #tpu.memory_space<vmem>>, vector<1x256xf32>
    %77 = arith.addf %8, %76 : vector<1x256xf32>
    %cst_51 = arith.constant 0.000000e+00 : f32
    %78 = vector.broadcast %cst_51 : f32 to vector<1x256xf32>
    %79 = arith.subf %78, %77 : vector<1x256xf32>
    %80 = math.exp %79 : vector<1x256xf32>
    %cst_52 = arith.constant 1.000000e+00 : f32
    %81 = vector.broadcast %cst_52 : f32 to vector<1x256xf32>
    %82 = arith.addf %81, %80 : vector<1x256xf32>
    %83 = tpu.reciprocal %82 : vector<1x256xf32> -> vector<1x256xf32>
    %84 = vector.broadcast %83 : vector<1x256xf32> to vector<4x256xf32>
    %85 = arith.mulf %84, %13 : vector<4x256xf32>
    %c0_53 = arith.constant 0 : index
    %c0_54 = arith.constant 0 : index
    %86 = vector.load %arg4[%c0_53, %c0_54] : memref<4x1xf32, #tpu.memory_space<vmem>>, vector<4x1xf32>
    %87 = vector.broadcast %86 : vector<4x1xf32> to vector<4x256xf32>
    %88 = arith.addf %85, %87 : vector<4x256xf32>
    %c0_55 = arith.constant 0 : index
    %c0_56 = arith.constant 0 : index
    %c0_57 = arith.constant 0 : index
    %89 = vector.load %arg7[%c0_55, %c0_56, %c0_57] : memref<1x4x256xf32, #tpu.memory_space<vmem>>, vector<1x4x256xf32>
    %90 = vector.shape_cast %89 : vector<1x4x256xf32> to vector<4x256xf32>
    %91 = vector.shape_cast %88 : vector<4x256xf32> to vector<1x4x256xf32>
    tpu.vector_store %arg7[%c0_55, %c0_56, %c0_57], %91 {strides = array<i32>} : memref<1x4x256xf32, #tpu.memory_space<vmem>>, vector<1x4x256xf32>,
    return
  }
  func.func @transform_0(%arg0: i32) -> (i32, i32, i32) {
    %c0_i32 = arith.constant 0 : i32
    %c0_i32_0 = arith.constant 0 : i32
    %c0_i32_1 = arith.constant 0 : i32
    return %arg0, %c0_i32, %c0_i32_0 : i32, i32, i32
  }
  func.func @transform_1(%arg0: i32) -> (i32, i32) {
    %c0_i32 = arith.constant 0 : i32
    %c0_i32_0 = arith.constant 0 : i32
    %c0_i32_1 = arith.constant 0 : i32
    return %c0_i32, %c0_i32_0 : i32, i32
  }
  func.func @transform_2(%arg0: i32) -> (i32, i32) {
    %c0_i32 = arith.constant 0 : i32
    %c0_i32_0 = arith.constant 0 : i32
    %c0_i32_1 = arith.constant 0 : i32
    return %c0_i32, %c0_i32_0 : i32, i32
  }
  func.func @transform_3(%arg0: i32) -> (i32, i32) {
    %c0_i32 = arith.constant 0 : i32
    %c0_i32_0 = arith.constant 0 : i32
    %c0_i32_1 = arith.constant 0 : i32
    return %c0_i32, %c0_i32_0 : i32, i32
  }
  func.func @transform_4(%arg0: i32) -> (i32, i32) {
    %c0_i32 = arith.constant 0 : i32
    %c0_i32_0 = arith.constant 0 : i32
    %c0_i32_1 = arith.constant 0 : i32
    return %c0_i32, %c0_i32_0 : i32, i32
  }
  func.func @transform_5(%arg0: i32) -> (i32, i32) {
    %c0_i32 = arith.constant 0 : i32
    %c0_i32_0 = arith.constant 0 : i32
    %c0_i32_1 = arith.constant 0 : i32
    return %c0_i32, %c0_i32_0 : i32, i32
  }
  func.func @transform_6(%arg0: i32) -> (i32, i32, i32) {
    %c0_i32 = arith.constant 0 : i32
    %c0_i32_0 = arith.constant 0 : i32
    %c0_i32_1 = arith.constant 0 : i32
    return %arg0, %c0_i32, %c0_i32_0 : i32, i32, i32
  }
}

</mosaic_0001>

<bundles_post_ra>
// kernel: tpu_custom_call.1
= control target key start
LH: loop header
LB: loop body
LE: loop exit
PB: predicated region body
PF: predicated region fallthrough
CT: control target
= control target key end

     0   :  { %11 = vsyncpa [#allocation6], 0  ;;  %s1364_s0 = inlined_call_operand.vmem [shape: f32[2,4,256], index: 0, kind: input, shape index: {}]   ;;  %s1365_s1 = inlined_call_operand.vmem [shape: f32[6,4], index: 1, kind: input, shape index: {}]   ;;  %s1366_s2 = inlined_call_operand.vmem [shape: f32[2,1], index: 2, kind: input, shape index: {}]   ;;  %s1367_s3 = inlined_call_operand.vmem [shape: f32[4,1], index: 3, kind: input, shape index: {}]   ;;  %s1368_s4 = inlined_call_operand.vmem [shape: f32[16,8], index: 4, kind: input, shape index: {}]   ;;  %s1369_s5 = inlined_call_operand.vmem [shape: f32[16,16], index: 5, kind: input, shape index: {}]   ;;  %s1370_s6 = inlined_call_operand.hbm [shape: f32[2,4,256], index: 6, kind: output, shape index: {}]  }
   0x1   :  { %13 = vsyncpa [#allocation6 + $0x1], 0  ;;  %s1146_s21 = smov 0   ;;  %s1148_s22 = smov 0  }
   0x2   :  { %s1150_s23 = smov 0   ;;  %s1152_s24 = smov 0  }
   0x3 LB: > { %s1167_s25 = sadd.s32 4294967295, %s1095_s24   ;;  %s929_s26 = sadd.s32 4294967294, %s1095_s24   ;;  %s1095_s24 = sphi %s1152_s24, %s1376_s24   ;;  %s1091_s23 = sphi %s1150_s23, %s1375_s23   ;;  %s1087_s22 = sphi %s1148_s22, %s1374_s22   ;;  %s1083_s21 = sphi %s1146_s21, %s1373_s21  }
   0x4   : > { %s1171_s27 = sadd.s32 1, %s1095_s24   ;;  %s157_s28 = sadd.s32 1, %s1091_s23 }
   0x5   : > { %s154_s29 = ssub.s32 %s1095_s24, %s1171_s27  ;;  %p167_p0 = scmp.ne.s32.totalorder %s1091_s23, %s1087_s22 }
   0x6   : > { %p155_p1 = scmp.eq.s32.totalorder %s154_s29, 0  ;;  %p168_p2 = scmp.eq.s32.totalorder %s1167_s25, 1 }
   0x7   : > { %p173_p3 = scmp.ne.s32.totalorder %s1087_s22, %s1083_s21  ;;  %p174_p4 = scmp.eq.s32.totalorder %s929_s26, 1 }
   0x8   : > { %s1182_s30 = scalar_select %p155_p1, %s1091_s23, %s157_s28  }
   0x9   : > { %p1184_p5 = por %p168_p2, %p167_p0  ;;  %p1188_p6 = por %p174_p4, %p173_p3 }
   0xa   : > { %p932_p7 = scmp.ge.s32.totalorder %s1095_s24, 1  ;;  %p215_p8 = scmp.lt.s32.totalorder %s1095_s24, 3 }
   0xc   : > { %p216_p9 = pnand %p932_p7, %p215_p8 }
   0xd   : > { %p245_p10 = scmp.lt.s32.totalorder (!%p216_p9), %s1167_s25, 1  ;;  %v342_v0 = vlaneseq (!%p216_p9)  ;;  %v1097_v1 = vmov (!%p216_p9), 0.0   ;;  %v334_v2 = vld [vmem:[%s1366_s2] sm:$0x3] (!%p216_p9)  ;;  %v1098_v3 = vmov (!%p216_p9), 0   ;;  %vm258_vm1 = vcmask (!%p216_p9), 1043456  }
   0xe   : > { %219 = sbr.rel (%p216_p9) target bundleno = 1270 (0x4f6), region = 44  ;;  %327 = vmatprep.mubr.f32.mxu0 (!%p216_p9), %v1097_v1  ;;  %1023 = vset.pattern.permute.xlu0 (!%p216_p9), %v1098_v3  ;;  %v251_v6 = vld [vmem:[%s1365_s1] sm:$0x3f] (!%p216_p9)  ;;  %vm254_vm2 = vcmask (!%p216_p9), 31744   ;;  %v1099_v7 = vmov (!%p216_p9), 1966171168  }
   0xf   : > { %vm344_vm0 = vcmp.lt.s32.totalorder (!%p216_p9), %v342_v0, 17  ;;  %337 = vperm.xlu0 (!%p216_p9), %1023, %v334_v2   ;;  %v351_v8 = vunpack.c.l.s4 (!%p216_p9), %v1099_v7  ;;  %v354_v11 = vshrl.u32 (!%p216_p9), %v342_v0, 7  ;;  %vm366_vm3 = vcmp.lt.s32.totalorder (!%p216_p9), %v342_v0, 256  ;;  %s1100_s18 = smov (!%p216_p9), 127   ;;  %s1101_s19 = smov (!%p216_p9), 112   ;;  %v458_v39 = vld [vmem:[%s1369_s5] sm:$0xff] (!%p216_p9) }
  0x10   : > { %346 = vst.msk [vmem:[#allocation2 + $0x2] sm:$0x1] (!%p216_p9), %vm344_vm0, %v1097_v1  ;;  %vm389_vm4 = vcmask (!%p216_p9), 1039360   ;;  %vm421_vm5 = vcmask (!%p216_p9), 916480   ;;  %v459_v40 = vld [vmem:[%s1369_s5 + $0x8] sm:$0xff] (!%p216_p9)  ;;  %v1102_v44 = vmov (!%p216_p9), 0.0|0.0  }
  0x11   : > { %v352_v10 = vunpack.c.0.s8 (!%p216_p9), %v351_v8  ;;  %v1226_v21 = vsub.s32 (!%p216_p9), 0, %v354_v11  ;;  %v381_v22 = vsub.s32 (!%p216_p9), 2, %v354_v11  ;;  %v1229_v25 = vsub.s32 (!%p216_p9), 1, %v354_v11  ;;  %968 = vmatprep.subr.bf16.mxu1 (!%p216_p9), %v1102_v44  ;;  %s1104_s9 = smov (!%p216_p9), 64   ;;  %s1105_s10 = smov (!%p216_p9), 96   ;;  %v534_v60 = vld [vmem:[%s1368_s4] sm:$0xff] (!%p216_p9) }
  0x12   : > { %v969_v45 = vpack.c.bf16 (!%p216_p9), %v459_v40, %v458_v39  ;;  %vm1103_vm6 = vmmov (!%p216_p9), 0   ;;  %vm428_vm7 = vcmask (!%p216_p9), 123905   ;;  %vm460_vm8 = vcmask (!%p216_p9), 130048   ;;  %v535_v62 = vld [vmem:[%s1368_s4 + $0x8] sm:$0xff] (!%p216_p9)  ;;  %s1107_s16 = smov (!%p216_p9), 16   ;;  %s1108_s17 = smov (!%p216_p9), 48  }
  0x13   : > { %v1219_v16 = vsub.s32 (!%p216_p9), %v352_v10, %v354_v11  ;;  %960 = vmatprep.mubr.msk.f32.mxu1 (!%p216_p9), %vm1103_vm6, %v1097_v1  ;;  %vm536_vm9 = vcmask (!%p216_p9), 64512   ;;  %vm618_vm10 = vcmp.lt.s32.totalorder (!%p216_p9), %v342_v0, 16  ;;  %vm647_vm11 = vcmp.ge.s32.totalorder (!%p216_p9), %v342_v0, 16  ;;  %s949_s29 = sshll.u32 (!%p216_p9), %s1167_s25, 7 }
  0x14   : > { %970 = vmatpush3.bf16.msra.mxu1 (!%p216_p9), %v969_v45  ;;  %vm648_vm12 = vcmp.lt.s32.totalorder (!%p216_p9), %v342_v0, 32  ;;  %vm655_vm14 = vcmp.ge.s32.totalorder (!%p216_p9), %v342_v0, 32  ;;  %vm656_vm15 = vcmp.lt.s32.totalorder (!%p216_p9), %v342_v0, 48  ;;  %s1322_s13 = scalar_lea.hbm (!%p216_p9), %s1370_s6, %s949_s29 }
  0x15   : > { %s246_s11 = scalar_select %p245_p10, %s1167_s25, 1  ;;  %vm649_vm13 = vmand %vm647_vm11, %vm648_vm12  ;;  %vm709_vm11 = vcmp.lt.s32.totalorder %v342_v0, 112 }
  0x16   : > { %vm657_vm0 = vmand %vm655_vm14, %vm656_vm15  ;;  %vm717_vm14 = vcmp.lt.s32.totalorder %v342_v0, 128  ;;  %s1110_s25 = smov [#allocation5]  }
  0x17   : > { %s948_s12 = sshll.u32 %s246_s11, 3  ;;  %s1106_s11 = smov 32  }
  0x18   : > { %s249_s15 = scalar_lea.vmem %s1364_s0, %s948_s12 }
  0x19   : > { %v250_v4 = vld [vmem:[%s249_s15] sm:$0xff] }
  0x1a   : > { %v253_v5 = vcombine.high %v250_v4, %v250_v4 }
  0x1c   : > { %936 = vmatprep.subr.msk.mxu0 %vm258_vm1, %v253_v5 }
  0x1d   : > { %937 = vmatpush1.msk.msra.mxu0 %vm258_vm1, %v250_v4  ;;  %vm663_vm1 = vcmp.ge.s32.totalorder %v342_v0, 48 }
  0x1e   : > { %938 = vmatmul.mubr.msk.f32.vlgmr.msra.gmra.mrb[0].mxu0 %vm254_vm2, %v251_v6  ;;  %vm664_vm2 = vcmp.lt.s32.totalorder %v342_v0, 64 }
  0x1f   : > { %965 = vmatprep.mubr.msk.f32.mxu0 %vm536_vm9, %v534_v60 }
  0x8e   : > { %v338_v9 = vpop.permute.xlu0 %337 }
  0xf1   : > { %v1209_v12 = vpop.f32.mrb[0].mxu0 }
  0xf2   : > { %v1212_v13 = vadd.f32 %v338_v9, %v1209_v12  ;;  %v1214_v14 = vpop.f32.mrb[1].mxu0 }
  0xf3   : > { %v1217_v15 = vadd.f32 %v338_v9, %v1214_v14 }
  0xf5   : > { %v349_v17 = vcombine.low %v1212_v13, %v1217_v15 }
  0xf7   : > { %v356_v18 = vrot.slane %v349_v17, %v1219_v16 }
  0xf9   : > { %v357_v19 = vcombine.high %v356_v18, %v356_v18 }
  0xfb   : > { %v364_v20 = vrot.slane %v357_v19, %v1219_v16 }
  0xfd   : > { %368 = vst.msk [vmem:[#allocation2] sm:$0x3] %vm366_vm3, %v364_v20  ;;  %vm685_vm3 = vcmp.ge.s32.totalorder %v342_v0, 64 }
 0x104   : > { %v369_v23 = vld [vmem:[#allocation2] sm:$0x7] }
 0x105   : > { %396 = vrot.lane.b32.xlu0 %v369_v23, %s1100_s18  ;;  %v374_v24 = vrot.slane %v369_v23, %v1226_v21  ;;  %v382_v26 = vrot.slane %v369_v23, %v381_v22  ;;  %v378_v27 = vrot.slane %v369_v23, %v1229_v25 }
 0x107   : > { %383 = vrot.lane.b32.xlu1 %v374_v24, %s1100_s18 }
 0x109   : > { %387 = vrot.lane.b32.xlu0 %v382_v26, %s1100_s18 }
 0x10b   : > { %385 = vrot.lane.b32.xlu1 %v378_v27, %s1100_s18  ;;  %s1109_s18 = smov 80  }
 0x177   : > { %v397_v28 = vpop.permute.xlu0 %396 }
 0x178   : > { %v398_v29 = vrot.slane %v397_v28, 1 }
 0x179   : > { %v384_v35 = vpop.permute.xlu1 %383 }
 0x17a   : > { %v399_v30 = vsel %vm389_vm4, %v397_v28, %v398_v29 }
 0x17b   : > { %v401_v31 = vmax.f32 %v369_v23, %v399_v30  ;;  %v388_v37 = vpop.permute.xlu0 %387 }
 0x17d   : > { %v410_v32 = vrot.slane %v401_v31, %v1229_v25  ;;  %v406_v33 = vrot.slane %v401_v31, %v1226_v21  ;;  %v414_v34 = vrot.slane %v401_v31, %v381_v22  ;;  %v386_v36 = vpop.permute.xlu1 %385 }
 0x17e   : > { %v390_v38 = vsel %vm389_vm4, %v384_v35, %v386_v36  ;;  %v391_v46 = vsel %vm389_vm4, %v386_v36, %v388_v37  ;;  %v833_v36 = vld [vmem:[%s1367_s3] sm:$0xf]  ;;  %vm686_vm4 = vcmp.lt.s32.totalorder %v342_v0, 80 }
 0x17f   : > { %417 = vrot.lane.b32.xlu0 %v410_v32, %s1101_s19  ;;  %415 = vrot.lane.b32.xlu1 %v406_v33, %s1101_s19  ;;  %v394_v41 = vmax.f32 %v1212_v13, %v390_v38  ;;  %v395_v49 = vmax.f32 %v1217_v15, %v391_v46  ;;  %vm687_vm6 = vmand %vm685_vm3, %vm686_vm4 }
 0x183   : > { %419 = vrot.lane.b32.xlu1 %v414_v34, %s1101_s19 }
 0x1f1   : > { %v418_v42 = vpop.permute.xlu0 %417  ;;  %v416_v43 = vpop.permute.xlu1 %415 }
 0x1f2   : > { %v422_v47 = vsel %vm421_vm5, %v416_v43, %v418_v42 }
 0x1f3   : > { %v426_v48 = vmax.f32 %v394_v41, %v422_v47 }
 0x1f5   : > { %429 = vst.msk [vmem:[#allocation3 - $0x1] sm:$0x2] %vm428_vm7, %v426_v48  ;;  %435 = vrot.lane.b32.xlu1 %v426_v48, %s1104_s9  ;;  %431 = vrot.lane.b32.xlu0 %v426_v48, %s1105_s10  ;;  %v420_v50 = vpop.permute.xlu1 %419 }
 0x1f6   : > { %v423_v51 = vsel %vm421_vm5, %v418_v42, %v420_v50  ;;  %vm665_vm5 = vmand %vm663_vm1, %vm664_vm2  ;;  %vm847_vm1 = vcmask 1045508  }
 0x1f7   : > { %v427_v52 = vmax.f32 %v395_v49, %v423_v51 }
 0x1f9   : > { %443 = vst.msk [vmem:[#allocation3 + $0x3] sm:$0x2] %vm428_vm7, %v427_v52  ;;  %439 = vrot.lane.b32.xlu0 %v426_v48, %s1106_s11  ;;  %445 = vrot.lane.b32.xlu1 %v427_v52, %s1105_s10 }
 0x1fd   : > { %449 = vrot.lane.b32.xlu0 %v427_v52, %s1104_s9  ;;  %453 = vrot.lane.b32.xlu1 %v427_v52, %s1106_s11 }
 0x267   : > { %v432_v53 = vpop.permute.xlu0 %431  ;;  %v436_v54 = vpop.permute.xlu1 %435 }
 0x268   : > { %434 = vst.msk [vmem:[#allocation3] sm:$0x2] %vm428_vm7, %v432_v53  ;;  %438 = vst.msk [vmem:[#allocation3 + $0x1] sm:$0x2] %vm428_vm7, %v436_v54 }
 0x26b   : > { %v440_v55 = vpop.permute.xlu0 %439  ;;  %v446_v56 = vpop.permute.xlu1 %445 }
 0x26c   : > { %442 = vst.msk [vmem:[#allocation3 + $0x2] sm:$0x2] %vm428_vm7, %v440_v55  ;;  %448 = vst.msk [vmem:[#allocation3 + $0x4] sm:$0x2] %vm428_vm7, %v446_v56 }
 0x26f   : > { %v450_v57 = vpop.permute.xlu0 %449  ;;  %v454_v58 = vpop.permute.xlu1 %453 }
 0x270   : > { %452 = vst.msk [vmem:[#allocation3 + $0x5] sm:$0x2] %vm428_vm7, %v450_v57  ;;  %456 = vst.msk [vmem:[#allocation3 + $0x6] sm:$0x2] %vm428_vm7, %v454_v58  ;;  %vm700_vm7 = vcmp.ge.s32.totalorder %v342_v0, 80 }
 0x277   : > { %v457_v59 = vld [vmem:[#allocation3] sm:$0xff] }
 0x278   : > { %961 = vmatmul.mubr.msk.f32.vlgmr.msra.gmra.mrb[0].mxu1 %vm460_vm8, %v457_v59  ;;  %vm701_vm8 = vcmp.lt.s32.totalorder %v342_v0, 96 }
 0x34b   : > { %v530_v61 = vpop.f32.mrb[0].mxu1 }
 0x34c   : > { %v962_v63 = vpop.f32.mrb[1].mxu1  ;;  %963 = vmatprep.subr.mxu0 %v530_v61 }
 0x34d   : > { %964 = vmatpush3.msra.mxu0 %v530_v61 }
 0x34e   : > { %966 = vmatmul.mubr.msk.f32.vlgmr.msra.gmra.mrb[2].mxu0 %vm536_vm9, %v535_v62  ;;  %vm702_vm9 = vmand %vm700_vm7, %vm701_vm8 }
 0x421   : > { %v967_v1 = vpop.f32.mrb[2].mxu0 }
 0x422   : > { %v728_v2 = vrot.slane %v967_v1, %v1219_v16  ;;  %v609_v3 = vpop.f32.mrb[3].mxu0  ;;  %720 = vst.msk [vmem:[#allocation4 + $0x1] sm:$0x1] %vm618_vm10, %v967_v1  ;;  %v758_v7 = vcombine.high %v967_v1, %v967_v1 }
 0x423   : > { %620 = vst.msk [vmem:[#allocation4] sm:$0x1] %vm618_vm10, %v609_v3  ;;  %v628_v4 = vrot.slane %v609_v3, %v1219_v16  ;;  %v667_v11 = vcombine.high %v609_v3, %v609_v3  ;;  %vm708_vm10 = vcmp.ge.s32.totalorder %v342_v0, 96 }
 0x424   : > { %v729_v5 = vcombine.high %v728_v2, %v728_v2  ;;  %v736_v9 = vrot.slane %v728_v2, %v1219_v16  ;;  %v765_v18 = vrot.slane %v758_v7, %v1219_v16  ;;  %vm710_vm12 = vmand %vm708_vm10, %vm709_vm11 }
 0x425   : > { %v629_v6 = vcombine.high %v628_v4, %v628_v4  ;;  %v636_v10 = vrot.slane %v628_v4, %v1219_v16  ;;  %v674_v20 = vrot.slane %v667_v11, %v1219_v16 }
 0x426   : > { %v743_v8 = vrot.slane %v729_v5, %v1219_v16  ;;  %v748_v19 = vcombine.high %v736_v9, %v736_v9  ;;  %v772_v23 = vrot.slane %v765_v18, %v1219_v16  ;;  %v777_v27 = vcombine.high %v765_v18, %v765_v18 }
 0x427   : > { %v643_v17 = vrot.slane %v629_v6, %v1219_v16  ;;  %v651_v22 = vcombine.high %v636_v10, %v636_v10  ;;  %v681_v24 = vrot.slane %v674_v20, %v1219_v16  ;;  %v689_v28 = vcombine.high %v674_v20, %v674_v20 }
 0x428   : > { %744 = vrot.lane.b32.xlu1 %v743_v8, %s1107_s16  ;;  %v753_v26 = vcombine.high %v743_v8, %v743_v8  ;;  %v784_v30 = vrot.slane %v777_v27, %v1219_v16  ;;  %v789_v32 = vcombine.high %v772_v23, %v772_v23 }
 0x429   : > { %644 = vrot.lane.b32.xlu0 %v643_v17, %s1107_s16  ;;  %v659_v29 = vcombine.high %v643_v17, %v643_v17  ;;  %v696_v31 = vrot.slane %v689_v28, %v1219_v16  ;;  %v704_v33 = vcombine.high %v681_v24, %v681_v24  ;;  %s1037_s16 = sshll.u32 %s1110_s25, 4  ;;  %s1038_s16 = int_to_ptr.vmem [resolvable:$false] %s1037_s16 }
 0x42a   : > { %v794_v34 = vcombine.high %v784_v30, %v784_v30 }
 0x42b   : > { %v712_v35 = vcombine.high %v696_v31, %v696_v31 }
 0x42c   : > { %749 = vrot.lane.b32.xlu1 %v748_v19, %s1106_s11 }
 0x42d   : > { %652 = vrot.lane.b32.xlu0 %v651_v22, %s1106_s11 }
 0x430   : > { %773 = vrot.lane.b32.xlu1 %v772_v23, %s1104_s9 }
 0x431   : > { %682 = vrot.lane.b32.xlu0 %v681_v24, %s1104_s9 }
 0x434   : > { %754 = vrot.lane.b32.xlu1 %v753_v26, %s1108_s17 }
 0x435   : > { %660 = vrot.lane.b32.xlu0 %v659_v29, %s1108_s17  ;;  %s1039_s17 = scalar_lea.vmem %s1038_s16, 256 }
 0x438   : > { %785 = vrot.lane.b32.xlu1 %v784_v30, %s1109_s18 }
 0x439   : > { %697 = vrot.lane.b32.xlu0 %v696_v31, %s1109_s18 }
 0x43c   : > { %790 = vrot.lane.b32.xlu1 %v789_v32, %s1105_s10 }
 0x43d   : > { %705 = vrot.lane.b32.xlu0 %v704_v33, %s1105_s10 }
 0x440   : > { %795 = vrot.lane.b32.xlu1 %v794_v34, %s1101_s19 }
 0x441   : > { %713 = vrot.lane.b32.xlu0 %v712_v35, %s1101_s19  ;;  %s242_s19 = sand.u32 1, %s1087_s22  }
 0x442   : > { %s933_s28 = sshll.u32 %s242_s19, 3  ;;  %s856_s14 = scalar_lea.sflag [#allocation6], %s242_s19 }
 0x443   : > { %s244_s9 = scalar_lea.vmem [#allocation5], %s933_s28 }
 0x444   : > { %s870_s10 = sshll.u32 %s244_s9, 4  ;;  %s1324_s10 = int_to_ptr.vmem [resolvable:$true] %s870_s10 }
 0x445   : > { %836 = vperm.xlu0 %1023, %v833_v36   ;;  %s1033_s15 = scalar_lea.vmem %s1324_s10, 128  ;;  %p1040_p0 = scmp.lt.s32.totalorder %s1324_s10, %s1038_s16 }
 0x446   : > { %p1034_p11 = scmp.ne.s32.totalorder %s1324_s10, %s1033_s15  ;;  %p1041_p1 = scmp.lt.s32.totalorder %s1039_s17, %s1033_s15 }
 0x448   : > { %p1035_p12 = pnand %p1034_p11, %p1184_p5  ;;  %p1042_p2 = por %p1041_p1, %p1040_p0 }
 0x44a   : > { %p1036_p13 = pneg %p1035_p12 }
 0x44c   : > { %p1043_p3 = pnand %p1042_p2, %p1036_p13 }
 0x49a   : > { %v745_v16 = vpop.permute.xlu1 %744 }
 0x49b   : > { %747 = vst.msk [vmem:[#allocation4 + $0x1] sm:$0x1] %vm649_vm13, %v745_v16  ;;  %v645_v37 = vpop.permute.xlu0 %644 }
 0x49c   : > { %650 = vst.msk [vmem:[#allocation4] sm:$0x1] %vm649_vm13, %v645_v37  ;;  %vm716_vm13 = vcmp.ge.s32.totalorder %v342_v0, 112 }
 0x49d   : > { %vm718_vm15 = vmand %vm716_vm13, %vm717_vm14 }
 0x49e   : > { %v750_v38 = vpop.permute.xlu1 %749 }
 0x49f   : > { %752 = vst.msk [vmem:[#allocation4 + $0x1] sm:$0x1] %vm657_vm0, %v750_v38  ;;  %v653_v39 = vpop.permute.xlu0 %652 }
 0x4a0   : > { %658 = vst.msk [vmem:[#allocation4] sm:$0x1] %vm657_vm0, %v653_v39  ;;  %vm846_vm0 = vcmask 1041408  }
 0x4a1   : > { %vm848_vm2 = vmor %vm846_vm0, %vm847_vm1 }
 0x4a2   : > { %v774_v40 = vpop.permute.xlu1 %773 }
 0x4a3   : > { %v683_v41 = vpop.permute.xlu0 %682 }
 0x4a6   : > { %v755_v42 = vpop.permute.xlu1 %754 }
 0x4a7   : > { %757 = vst.msk [vmem:[#allocation4 + $0x1] sm:$0x1] %vm665_vm5, %v755_v42  ;;  %v661_v43 = vpop.permute.xlu0 %660 }
 0x4a8   : > { %666 = vst.msk [vmem:[#allocation4] sm:$0x1] %vm665_vm5, %v661_v43 }
 0x4a9   : > { %776 = vst.msk [vmem:[#allocation4 + $0x1] sm:$0x1] %vm687_vm6, %v774_v40  ;;  %688 = vst.msk [vmem:[#allocation4] sm:$0x1] %vm687_vm6, %v683_v41 }
 0x4aa   : > { %v786_v44 = vpop.permute.xlu1 %785 }
 0x4ab   : > { %788 = vst.msk [vmem:[#allocation4 + $0x1] sm:$0x1] %vm702_vm9, %v786_v44  ;;  %v698_v45 = vpop.permute.xlu0 %697 }
 0x4ac   : > { %703 = vst.msk [vmem:[#allocation4] sm:$0x1] %vm702_vm9, %v698_v45 }
 0x4ae   : > { %v791_v46 = vpop.permute.xlu1 %790 }
 0x4af   : > { %793 = vst.msk [vmem:[#allocation4 + $0x1] sm:$0x1] %vm710_vm12, %v791_v46  ;;  %v706_v47 = vpop.permute.xlu0 %705 }
 0x4b0   : > { %711 = vst.msk [vmem:[#allocation4] sm:$0x1] %vm710_vm12, %v706_v47 }
 0x4b2   : > { %v796_v48 = vpop.permute.xlu1 %795 }
 0x4b3   : > { %798 = vst.msk [vmem:[#allocation4 + $0x1] sm:$0x1] %vm718_vm15, %v796_v48  ;;  %v714_v49 = vpop.permute.xlu0 %713 }
 0x4b4   : > { %719 = vst.msk [vmem:[#allocation4] sm:$0x1] %vm718_vm15, %v714_v49 }
 0x4bb   : > { %v799_v50 = vld [vmem:[#allocation4] sm:$0x3] }
 0x4bc   : > { %v804_v51 = vrot.slane %v799_v50, %v1226_v21  ;;  %v808_v52 = vrot.slane %v799_v50, %v1229_v25 }
 0x4be   : > { %v811_v53 = vadd.f32 %v804_v51, %v1212_v13  ;;  %v812_v54 = vadd.f32 %v808_v52, %v1217_v15 }
 0x4c0   : > { %v813_v0 = vsub.f32 0.0, %v811_v53  ;;  %v814_v55 = vsub.f32 0.0, %v812_v54 }
 0x4c2   : > { %v815_v56 = vmul.f32 1.442695, %v813_v0  ;;  %v817_v57 = vmul.f32 1.442695, %v814_v55 }
 0x4c4   : > { %1025 = vpow2.f32 %v815_v56  ;;  %v837_v25 = vpop.permute.xlu0 %836 }
 0x4c5   : > { %1027 = vpow2.f32 %v817_v57  ;;  %v838_v2 = vrot.slane %v837_v25, 6 }
 0x4ce   : > { %v1026_v58 = vpop.eup %1025 }
 0x4cf   : > { %v1028_v59 = vpop.eup %1027  ;;  %v819_v60 = vadd.f32 1.0, %v1026_v58 }
 0x4d0   : > { %v820_v61 = vadd.f32 1.0, %v1028_v59 }
 0x4d1   : > { %1029 = vrcp.f32 %v819_v60 }
 0x4d2   : > { %1031 = vrcp.f32 %v820_v61 }
 0x4db   : > { %v1030_v62 = vpop.eup %1029 }
 0x4dc   : > { %v1032_v63 = vpop.eup %1031  ;;  %v826_v13 = vrot.slane %v1030_v62, %v1226_v21 }
 0x4dd   : > { %v830_v15 = vrot.slane %v1032_v63, %v1226_v21 }
 0x4de   : > { %v831_v1 = vmul.f32 %v826_v13, %v1209_v12 }
 0x4df   : > { %v832_v3 = vmul.f32 %v830_v15, %v1214_v14 }
 0x4e0   : > { %v840_v4 = vadd.f32 %v838_v2, %v831_v1 }
 0x4e1   : > { %v841_v5 = vadd.f32 %v838_v2, %v832_v3 }
 0x4e3   : > { %v844_v6 = vcombine.low %v840_v4, %v841_v5  ;;  %v845_v7 = vcombine.high %v840_v4, %v841_v5 }
 0x4e5   : > { %v942_v8 = vrot.slane %v844_v6, 10  ;;  %v851_v9 = vrot.slane %v845_v7, 6 }
 0x4e7   : > { %v852_v12 = vsel %vm848_vm2, %v942_v8, %v851_v9 }
 0x4e8   : > { %854 = vst [vmem:[%s244_s9] sm:$0xff] %v852_v12 }
 0x4e9   : > { %1046 = shalt.err (!%p1043_p3)
}
 0x4ea   : > { %s1047_s18 = scalar_lea.hbm %s1322_s13, 128  ;;  %s1051_s19 = scalar_lea.hbm %s1370_s6, 256 }
 0x4eb   : > { %p1048_p4 = scmp.ne.s32.totalorder %s1322_s13, %s1047_s18  ;;  %p1052_p9 = scmp.lt.u32.totalorder %s1322_s13, %s1370_s6 }
 0x4ec   : > { %p1053_p10 = scmp.lt.u32.totalorder %s1051_s19, %s1047_s18  ;;  %p1055_p12 = scmp.lt.u32.totalorder %s1047_s18, %s1322_s13 }
 0x4ed   : > { %p1049_p7 = pnand %p1048_p4, %p1184_p5 }
 0x4ee   : > { %p1054_p11 = por %p1053_p10, %p1052_p9 }
 0x4ef   : > { %p1050_p8 = pneg %p1049_p7 }
 0x4f0   : > { %p1056_p13 = por %p1055_p12, %p1054_p11 }
 0x4f2   : > { %p1057_p0 = pnand %p1056_p13, %p1050_p8 }
 0x4f4   : > { %1060 = shalt.err (!%p1057_p0)
}
 0x4f5   : > { %971 = dma.vmem_to_hbm [thread:$0]  (%p1184_p5), %s1324_s10, 128, %s1322_s13, %s856_s14  }
 0x4f6 PF: > { %p977_p1 = scmp.ge.s32.totalorder %s1095_s24, 2  ;;  %s882_s9 = sand.u32 1, %s1083_s21  }
 0x4f7   : > { %s883_s11 = scalar_lea.sflag [#allocation6], %s882_s9 }
 0x4f8   : > { %p974_p2 = pnand %p977_p1, %p1188_p6 }
 0x4fa   : > { %1078 = dma.done.wait (!%p974_p2), %s883_s11, 128  }
 0x4fb   : > { %1080 = vsyncadd (!%p974_p2), %s883_s11, 4294967168  ;;  %p16_p3 = scmp.ge.s32.totalorder %s1171_s27, 4   ;;  %s1373_s21 = smov %s1087_s22 }
 0x4fc   : > { %s1374_s22 = smov %s1091_s23  ;;  %s1375_s23 = smov %s1182_s30 }
 0x4fd   : > { %s1376_s24 = smov %s1171_s27  ;;  %18 = sbr.rel (!%p16_p3) target bundleno = 3 (0x3), region = 79 }
 0x504   :  { %888 = vsyncpa [#allocation6], 1 }
 0x505   :  { %890 = vsyncpa [#allocation6 + $0x1], 1 }

</bundles_post_ra>
